<compile_context>
chip_gen: v6e
topology: v6e:2x2x1
jax: 0.10.0
libtpu: 0.0.40
codegen_flags: <defaults>
</compile_context>

<pallas_src>
import jax
import jax.numpy as jnp
from jax.experimental import pallas as pl
from jax.experimental.pallas import tpu as pltpu


def _round_up(x, m):
    return ((x + m - 1) // m) * m


def _block_diag(w1, w2):
    r1, c1 = w1.shape
    r2, c2 = w2.shape
    top = jnp.concatenate([w1, jnp.zeros((r1, c2), w1.dtype)], axis=1)
    bot = jnp.concatenate([jnp.zeros((r2, c1), w2.dtype), w2], axis=1)
    return jnp.concatenate([top, bot], axis=0)


def pack_twin_params(params1, params2, obs_dim, action_dim,
                     compute_dtype=jnp.bfloat16):
    """Fuse the two critics into one wider MLP and pack it into two slabs.

    params{1,2}: list of (w, b) with w: (d_in, d_out), b: (1, d_out).
    Returns (w_slab, b_slab, layout); `layout` is a static dict of offsets/dims.
    Every weight block is placed at an 8-aligned row offset and spans the full
    lane-padded width C, so all in-kernel slices are (8,128)-tile aligned.
    """
    assert len(params1) == len(params2)
    n_layers = len(params1)

    fused_w, fused_b = [], []
    for i, ((w1, b1), (w2, b2)) in enumerate(zip(params1, params2)):
        if i == 0:
            w = jnp.concatenate([w1, w2], axis=1)          # shared input
        else:
            w = _block_diag(w1, w2)                        # independent paths
        b = jnp.concatenate([b1.reshape(1, -1), b2.reshape(1, -1)], axis=1)
        fused_w.append(w.astype(jnp.float32))
        fused_b.append(b.astype(jnp.float32))

    d_in0 = obs_dim + action_dim
    r0 = _round_up(d_in0, 8)
    # Lane-pad every layer's fused output width to a multiple of 128 lanes so
    # each in-kernel slice is full-width (no masked loads / relayout copies)
    # and the final output is stored with dense lane-aligned stores.
    C = _round_up(max(w.shape[1] for w in fused_w), 128)

    # Row layout: layer-0 block has r0 rows, each deeper block has C rows
    # (padded weight rows are zero; the matching activation columns are zero).
    row_offs = [0]
    rows = r0
    for _ in range(1, n_layers):
        row_offs.append(rows)
        rows += C
    total_rows = _round_up(rows, 8)

    w_slab = jnp.zeros((total_rows, C), jnp.float32)
    for off, w in zip(row_offs, fused_w):
        w_slab = w_slab.at[off:off + w.shape[0], :w.shape[1]].set(w)

    # Each layer's bias row starts at an 8-aligned sublane offset.
    b_slab = jnp.zeros((8 * n_layers, C), jnp.float32)
    for i, b in enumerate(fused_b):
        b_slab = b_slab.at[8 * i:8 * i + 1, :b.shape[1]].set(b)

    layout = dict(
        n_layers=n_layers,
        d_in0=d_in0,
        r0=r0,
        C=C,
        row_offs=tuple(row_offs),
        compute_dtype=compute_dtype,
    )
    return w_slab.astype(compute_dtype), b_slab, layout


def make_twin_critic_kernel(layout):
    n_layers = layout["n_layers"]
    r0 = layout["r0"]
    C = layout["C"]
    row_offs = layout["row_offs"]
    cdt = layout["compute_dtype"]

    def leaky_relu(h):                       # slope 0.01, f32
        return jnp.maximum(h, 0.01 * h)

    def kernel(x_ref, w_ref, b_ref, out_ref):
        # Layer 0: single (TB, r0) x (r0, C) MXU matmul (state/action already
        # concatenated + zero-padded in the wrapper). bf16 operands, f32 acc.
        h = jnp.dot(x_ref[...], w_ref[0:r0, :],
                    preferred_element_type=jnp.float32)
        h = leaky_relu(h + b_ref[0:1, :])

        # Deeper fused (block-diagonal) layers: full tile-aligned (C, C) blocks.
        for i in range(1, n_layers):
            off = row_offs[i]
            h = jnp.dot(h.astype(cdt), w_ref[off:off + C, :],
                        preferred_element_type=jnp.float32)
            h = h + b_ref[8 * i:8 * i + 1, :]
            if i < n_layers - 1:             # LeakyReLU on hidden layers only
                h = leaky_relu(h)

        out_ref[...] = h                     # (TB, C): col0 = q1, col1 = q2, rest 0

    return kernel


def twin_critic_forward(state, action, w_slab, b_slab, layout, *, batch_tile=512):
    """Returns (q1, q2), each (B, 1) float32."""
    B = state.shape[0]
    d_in0, r0, C = layout["d_in0"], layout["r0"], layout["C"]
    cdt = layout["compute_dtype"]

    TB = min(batch_tile, _round_up(B, 8))
    B_pad = _round_up(B, TB)

    # Merge layer 0's two matmuls: one concatenated, zero-padded operand
    # (explicit zeros -- padded weight rows are zero, but 0*NaN would propagate).
    x = jnp.concatenate([state, action], axis=1).astype(jnp.float32)
    x = jnp.pad(x, ((0, B_pad - B), (0, r0 - d_in0))).astype(cdt)

    kernel = make_twin_critic_kernel(layout)
    out = pl.pallas_call(
        kernel,
        out_shape=jax.ShapeDtypeStruct((B_pad, C), jnp.float32),
        grid=(B_pad // TB,),
        in_specs=[
            pl.BlockSpec((TB, r0), lambda i: (i, 0)),        # batch-tiled input
            pl.BlockSpec(w_slab.shape, lambda i: (0, 0)),    # resident weight slab
            pl.BlockSpec(b_slab.shape, lambda i: (0, 0)),    # resident bias slab
        ],
        out_specs=pl.BlockSpec((TB, C), lambda i: (i, 0)),
        compiler_params=pltpu.CompilerParams(
            dimension_semantics=("parallel",),   # use v7x's 2nd TC; no-op on v5e/v6e
            vmem_limit_bytes=32 * 1024 * 1024,   # v5e scoped default is only 16 MiB
        ),
    )(x, w_slab, b_slab)

    return out[:B, 0:1], out[:B, 1:2]


def init_mlp_params(key, in_dim, hidden_dims):
    """Deterministic init: scaled normal weights, small normal biases."""
    params = []
    d_in = in_dim
    for d_out in hidden_dims:
        key, wk, bk = jax.random.split(key, 3)
        w = jax.random.normal(wk, (d_in, d_out), dtype=jnp.float32) / jnp.sqrt(
            jnp.float32(d_in))
        b = 0.1 * jax.random.normal(bk, (1, d_out), dtype=jnp.float32)
        params.append((w, b))
        d_in = d_out
    return key, params


def reference_forward(state, action, params1, params2, compute_dtype=jnp.float32):
    x = jnp.concatenate([state, action], axis=1).astype(jnp.float32)

    def mlp(p):
        h = x
        for i, (w, b) in enumerate(p):
            h = jnp.dot(h.astype(compute_dtype), w.astype(compute_dtype),
                        preferred_element_type=jnp.float32) + b.reshape(1, -1)
            if i < len(p) - 1:
                h = jnp.maximum(h, 0.01 * h)
        return h

    return mlp(params1), mlp(params2)


if __name__ == "__main__":
    # Small config consistent with the module's __init__.
    config = dict(
        obs_dim=12,
        action_dim=4,
        hidden_dims_critic=32,
        num_hidden_layers_critic=2,
    )
    hidden_dims = ([config["hidden_dims_critic"]]
                   * config["num_hidden_layers_critic"] + [1])
    in_dim = config["obs_dim"] + config["action_dim"]
    B = 20  # not a multiple of the batch tile -> exercises padded last tile

    key = jax.random.PRNGKey(0)
    key, params1 = init_mlp_params(key, in_dim, hidden_dims)
    key, params2 = init_mlp_params(key, in_dim, hidden_dims)

    key, sk, ak = jax.random.split(key, 3)
    state = jax.random.normal(sk, (B, config["obs_dim"]), dtype=jnp.float32)
    action = jax.random.normal(ak, (B, config["action_dim"]), dtype=jnp.float32)

    w_slab, b_slab, layout = pack_twin_params(
        params1, params2, config["obs_dim"], config["action_dim"])

    # batch_tile=8 -> 3-step batch grid with a zero-padded last tile.
    q1, q2 = twin_critic_forward(state, action, w_slab, b_slab, layout,
                                 batch_tile=8)
    jax.block_until_ready((q1, q2))

    assert q1.shape == (B, 1) and q2.shape == (B, 1)

    # Tight check vs. a reference using the same bf16 weights / operands.
    r1b, r2b = reference_forward(state, action, params1, params2,
                                 compute_dtype=jnp.bfloat16)
    assert jnp.allclose(q1, r1b, atol=1e-2, rtol=1e-2), float(jnp.max(jnp.abs(q1 - r1b)))
    assert jnp.allclose(q2, r2b, atol=1e-2, rtol=1e-2), float(jnp.max(jnp.abs(q2 - r2b)))

    # Loose sanity check vs. the original f32 module semantics (bf16 rounding).
    r1f, r2f = reference_forward(state, action, params1, params2,
                                 compute_dtype=jnp.float32)
    assert jnp.allclose(q1, r1f, atol=1e-1, rtol=1e-1), float(jnp.max(jnp.abs(q1 - r1f)))
    assert jnp.allclose(q2, r2f, atol=1e-1, rtol=1e-1), float(jnp.max(jnp.abs(q2 - r2f)))

    print("KERNEL_OK")
</pallas_src>

<mosaic_0001>
module attributes {stable_mosaic.version = 11 : i64} {
  func.func @kernel(%arg0: i32, %arg1: memref<8x16xbf16, #tpu.memory_space<vmem>>, %arg2: memref<272x128xbf16, #tpu.memory_space<vmem>>, %arg3: memref<24x128xf32, #tpu.memory_space<vmem>>, %arg4: memref<8x128xf32, #tpu.memory_space<vmem>>) attributes {dimension_semantics = [#tpu.dimension_semantics<parallel>], iteration_bounds = array<i64: 3>, scalar_prefetch = 0 : i64, scratch_operands = 0 : i64, tpu.core_type = #tpu.core_type<tc>, window_params = [{transform_indices = @transform_0, window_bounds = array<i64: 8, 16>}, {pipeline_mode = #tpu.pipeline_mode<synchronous>, transform_indices = @transform_1, window_bounds = array<i64: 272, 128>}, {pipeline_mode = #tpu.pipeline_mode<synchronous>, transform_indices = @transform_2, window_bounds = array<i64: 24, 128>}, {transform_indices = @transform_3, window_bounds = array<i64: 8, 128>}]} {
    %c0 = arith.constant 0 : index
    %c0_0 = arith.constant 0 : index
    %0 = vector.load %arg1[%c0, %c0_0] : memref<8x16xbf16, #tpu.memory_space<vmem>>, vector<8x16xbf16>
    %c0_1 = arith.constant 0 : index
    %c0_2 = arith.constant 0 : index
    %1 = vector.load %arg2[%c0_1, %c0_2] : memref<272x128xbf16, #tpu.memory_space<vmem>>, vector<16x128xbf16>
    %cst = arith.constant dense<0.000000e+00> : vector<8x128xf32>
    %2 = tpu.matmul %0, %1, %cst {dimension_numbers = #tpu.dot_dimension_numbers<[1], [0], [0], [1], [0, 0, 1, 1], [], []>} : vector<8x16xbf16>, vector<16x128xbf16>, vector<8x128xf32> -> vector<8x128xf32>
    %c0_3 = arith.constant 0 : index
    %c0_4 = arith.constant 0 : index
    %3 = vector.load %arg3[%c0_3, %c0_4] : memref<24x128xf32, #tpu.memory_space<vmem>>, vector<1x128xf32>
    %4 = vector.broadcast %3 : vector<1x128xf32> to vector<8x128xf32>
    %5 = arith.addf %2, %4 : vector<8x128xf32>
    %cst_5 = arith.constant 0.00999999977 : f32
    %6 = vector.broadcast %cst_5 : f32 to vector<8x128xf32>
    %7 = arith.mulf %6, %5 : vector<8x128xf32>
    %8 = arith.maximumf %5, %7 : vector<8x128xf32>
    %9 = arith.truncf %8 : vector<8x128xf32> to vector<8x128xbf16>
    %c16 = arith.constant 16 : index
    %c0_6 = arith.constant 0 : index
    %10 = vector.load %arg2[%c16, %c0_6] : memref<272x128xbf16, #tpu.memory_space<vmem>>, vector<128x128xbf16>
    %cst_7 = arith.constant dense<0.000000e+00> : vector<8x128xf32>
    %11 = tpu.matmul %9, %10, %cst_7 {dimension_numbers = #tpu.dot_dimension_numbers<[1], [0], [0], [1], [0, 0, 1, 1], [], []>} : vector<8x128xbf16>, vector<128x128xbf16>, vector<8x128xf32> -> vector<8x128xf32>
    %c8 = arith.constant 8 : index
    %c0_8 = arith.constant 0 : index
    %12 = vector.load %arg3[%c8, %c0_8] : memref<24x128xf32, #tpu.memory_space<vmem>>, vector<1x128xf32>
    %13 = vector.broadcast %12 : vector<1x128xf32> to vector<8x128xf32>
    %14 = arith.addf %11, %13 : vector<8x128xf32>
    %cst_9 = arith.constant 0.00999999977 : f32
    %15 = vector.broadcast %cst_9 : f32 to vector<8x128xf32>
    %16 = arith.mulf %15, %14 : vector<8x128xf32>
    %17 = arith.maximumf %14, %16 : vector<8x128xf32>
    %18 = arith.truncf %17 : vector<8x128xf32> to vector<8x128xbf16>
    %c144 = arith.constant 144 : index
    %c0_10 = arith.constant 0 : index
    %19 = vector.load %arg2[%c144, %c0_10] : memref<272x128xbf16, #tpu.memory_space<vmem>>, vector<128x128xbf16>
    %cst_11 = arith.constant dense<0.000000e+00> : vector<8x128xf32>
    %20 = tpu.matmul %18, %19, %cst_11 {dimension_numbers = #tpu.dot_dimension_numbers<[1], [0], [0], [1], [0, 0, 1, 1], [], []>} : vector<8x128xbf16>, vector<128x128xbf16>, vector<8x128xf32> -> vector<8x128xf32>
    %c16_12 = arith.constant 16 : index
    %c0_13 = arith.constant 0 : index
    %21 = vector.load %arg3[%c16_12, %c0_13] : memref<24x128xf32, #tpu.memory_space<vmem>>, vector<1x128xf32>
    %22 = vector.broadcast %21 : vector<1x128xf32> to vector<8x128xf32>
    %23 = arith.addf %20, %22 : vector<8x128xf32>
    %c0_14 = arith.constant 0 : index
    %c0_15 = arith.constant 0 : index
    %24 = vector.load %arg4[%c0_14, %c0_15] : memref<8x128xf32, #tpu.memory_space<vmem>>, vector<8x128xf32>
    tpu.vector_store %arg4[%c0_14, %c0_15], %23 {strides = array<i32>} : memref<8x128xf32, #tpu.memory_space<vmem>>, vector<8x128xf32>,
    return
  }
  func.func @transform_0(%arg0: i32) -> (i32, i32) {
    %c0_i32 = arith.constant 0 : i32
    %c0_i32_0 = arith.constant 0 : i32
    return %arg0, %c0_i32 : i32, i32
  }
  func.func @transform_1(%arg0: i32) -> (i32, i32) {
    %c0_i32 = arith.constant 0 : i32
    %c0_i32_0 = arith.constant 0 : i32
    %c0_i32_1 = arith.constant 0 : i32
    return %c0_i32, %c0_i32_0 : i32, i32
  }
  func.func @transform_2(%arg0: i32) -> (i32, i32) {
    %c0_i32 = arith.constant 0 : i32
    %c0_i32_0 = arith.constant 0 : i32
    %c0_i32_1 = arith.constant 0 : i32
    return %c0_i32, %c0_i32_0 : i32, i32
  }
  func.func @transform_3(%arg0: i32) -> (i32, i32) {
    %c0_i32 = arith.constant 0 : i32
    %c0_i32_0 = arith.constant 0 : i32
    return %arg0, %c0_i32 : i32, i32
  }
}

</mosaic_0001>

<bundles_post_ra>
// kernel: tpu_custom_call.1
= control target key start
LH: loop header
LB: loop body
LE: loop exit
PB: predicated region body
PF: predicated region fallthrough
CT: control target
= control target key end

     0   :  { %8 = vsyncpa [#allocation3], 0  ;;  %s1073_s0 = inlined_call_operand.vmem [shape: bf16[24,16], index: 0, kind: input, shape index: {}]   ;;  %s1074_s1 = inlined_call_operand.hbm [shape: bf16[272,128], index: 1, kind: input, shape index: {}]   ;;  %s1075_s2 = inlined_call_operand.hbm [shape: f32[24,128], index: 2, kind: input, shape index: {}]   ;;  %s1076_s3 = inlined_call_operand.hbm [shape: f32[24,128], index: 3, kind: output, shape index: {}]  }
   0x1   :  { %9 = vsyncpa [#allocation6], 0 }
   0x2   :  { %10 = vsyncpa [#allocation4], 0 }
   0x3   :  { %12 = vsyncpa [#allocation4 + $0x1], 0  ;;  %s910_s12 = smov 0   ;;  %s912_s13 = smov 0  }
   0x4   :  { %s914_s14 = smov 0   ;;  %s916_s15 = smov 0  }
   0x5 LB: > { %s931_s16 = sadd.s32 4294967295, %s879_s15   ;;  %s575_s17 = sadd.s32 4294967294, %s879_s15   ;;  %s879_s15 = sphi %s916_s15, %s1090_s15   ;;  %s875_s14 = sphi %s914_s14, %s1089_s14   ;;  %s871_s13 = sphi %s912_s13, %s1088_s13   ;;  %s867_s12 = sphi %s910_s12, %s1087_s12  }
   0x6   : > { %s935_s18 = sadd.s32 1, %s879_s15   ;;  %s93_s19 = sadd.s32 1, %s875_s14 }
   0x7   : > { %s90_s20 = ssub.s32 %s879_s15, %s935_s18  ;;  %p103_p0 = scmp.ne.s32.totalorder %s875_s14, %s871_s13 }
   0x8   : > { %p91_p1 = scmp.eq.s32.totalorder %s90_s20, 0  ;;  %p104_p2 = scmp.eq.s32.totalorder %s931_s16, 2 }
   0x9   : > { %p109_p3 = scmp.ne.s32.totalorder %s871_s13, %s867_s12  ;;  %p110_p4 = scmp.eq.s32.totalorder %s575_s17, 2 }
   0xa   : > { %s946_s21 = scalar_select %p91_p1, %s875_s14, %s93_s19  }
   0xb   : > { %p948_p5 = por %p104_p2, %p103_p0  ;;  %p952_p6 = por %p110_p4, %p109_p3 }
   0xc   : > { %p576_p7 = scmp.ge.s32.totalorder %s879_s15, 1  ;;  %p117_p8 = scmp.lt.s32.totalorder %s879_s15, 4 }
   0xd   : > { %s1079_s23 = scalar_select %p952_p6, 1, 0 }
   0xe   : > { %p1077_p9 = scmp.eq.s32.totalorder %s931_s16, 0  ;;  %p959_p10 = pnand %p576_p7, %p117_p8 }
   0xf   : > { %s881_s25 = smov [#allocation2]   ;;  %s882_s28 = smov [#allocation5]  }
  0x10   : > { %s129_s26 = sshll.u32 %s881_s25, 4  ;;  %p686_p11 = pneg %p959_p10  ;;  %s130_s26 = int_to_ptr.vmem [resolvable:$true] %s129_s26 }
  0x11   : > { %s142_s29 = sshll.u32 %s882_s28, 4  ;;  %s770_s30 = scalar_lea.vmem %s130_s26, 2176  ;;  %s143_s29 = int_to_ptr.vmem [resolvable:$true] %s142_s29 }
  0x12   : > { %p967_p12 = pnand %p1077_p9, %p686_p11  ;;  %p771_p0 = scmp.ne.s32.totalorder %s130_s26, %s770_s30 }
  0x13   : > { %p778_p3 = scmp.lt.s32.totalorder %s130_s26, %s130_s26  ;;  %p779_p4 = scmp.lt.s32.totalorder %s770_s30, %s770_s30 }
  0x14   : > { %p761_p13 = pneg %p967_p12 }
  0x15   : > { %p780_p7 = por %p779_p4, %p778_p3 }
  0x16   : > { %p773_p1 = pnand %p771_p0, %p761_p13 }
  0x18   : > { %p774_p2 = pneg %p773_p1 }
  0x1a   : > { %p781_p8 = pnand %p780_p7, %p774_p2 }
  0x1c   : > { %784 = shalt.err (!%p781_p8)
}
  0x1d   : > { %s883_s4 = smov 64   ;;  %s884_s5 = smov 4  }
  0x1e   : > { %689 = dma.hbm_to_vmem [thread:$0]  (!%p967_p12), %s1074_s1, 2176, %s130_s26, [#allocation3], %s883_s4, %s883_s4, %s884_s5  }
  0x1f   : > { %s796_s8 = scalar_lea.vmem %s143_s29, 384  ;;  %p804_p9 = scmp.lt.s32.totalorder %s143_s29, %s143_s29 }
  0x20   : > { %p797_p11 = scmp.ne.s32.totalorder %s143_s29, %s796_s8  ;;  %p805_p6 = scmp.lt.s32.totalorder %s796_s8, %s796_s8 }
  0x22   : > { %p799_p0 = pnand %p797_p11, %p761_p13  ;;  %p806_p3 = por %p805_p6, %p804_p9 }
  0x24   : > { %p800_p1 = pneg %p799_p0 }
  0x26   : > { %p807_p2 = pnand %p806_p3, %p800_p1 }
  0x28   : > { %810 = shalt.err (!%p807_p2)
}
  0x29   : > { %s885_s9 = smov 128   ;;  %s886_s10 = smov 8  }
  0x2a   : > { %692 = dma.hbm_to_vmem [thread:$0]  (!%p967_p12), %s1075_s2, 384, %s143_s29, [#allocation6], %s885_s9, %s885_s9, %s886_s10  }
  0x2b   : > { %165 = sbr.rel (%p959_p10) target bundleno = 670 (0x29e), region = 32  ;;  %p1082_p4 = scmp.eq.s32.totalorder (!%p959_p10), %s931_s16, 0 }
  0x30   : > { %854 = dma.done.wait (%p1082_p4), [#allocation3], 2176   ;;  %p1083_p13 = pmov %p1082_p4 }
  0x31   : > { %p1084_p6 = pmov %p1082_p4 }
  0x32   : > { %856 = vsyncadd (%p1083_p13), [#allocation3], 4294965120 }
  0x33   : > { %858 = dma.done.wait (%p1084_p6), [#allocation6], 384   ;;  %p1085_p9 = pmov %p1082_p4 }
  0x34   : > { %p192_p7 = scmp.lt.s32.totalorder %s931_s16, 2  ;;  %v887_v0 = vmov 0.0   ;;  %vm888_vm0 = vmmov 0   ;;  %v742_v1 = vld [vmem:[#allocation2] sm:$0xff]   ;;  %vm211_vm1 = vcmask 130048   ;;  %v744_v4 = vld [vmem:[#allocation2 + $0x38] sm:$0xff]  }
  0x35   : > { %860 = vsyncadd (%p1085_p9), [#allocation6], 4294966912  ;;  %630 = vmatprep.subr.bf16.mxu0 %v887_v0  ;;  %632 = vmatprep.mubr.msk.bf16.mxu0 %vm888_vm0, %v887_v0  ;;  %v743_v3 = vld [vmem:[#allocation2 + $0x40] sm:$0xff]   ;;  %v745_v5 = vld [vmem:[#allocation2 + $0x30] sm:$0xff]   ;;  %s189_s27 = sand.u32 1, %s871_s13   ;;  %s607_s29 = sshll.u32 %s931_s16, 7 }
  0x36   : > { %s193_s19 = scalar_select %p192_p7, %s931_s16, 2  ;;  %636 = vmatprep.subr.bf16.mxu1 %v887_v0  ;;  %652 = vmatprep.mubr.msk.bf16.mxu1 %vm888_vm0, %v887_v0  ;;  %v746_v6 = vld [vmem:[#allocation2 + $0x28] sm:$0xff]   ;;  %v747_v7 = vld [vmem:[#allocation2 + $0x20] sm:$0xff]   ;;  %v748_v8 = vld [vmem:[#allocation2 + $0x18] sm:$0xff]  }
  0x37   : > { %631 = vmatpush3.bf16.msra.mxu0 %v742_v1  ;;  %637 = vmatpush3.bf16.msra.mxu1 %v743_v3  ;;  %v749_v9 = vld [vmem:[#allocation2 + $0x10] sm:$0xff]   ;;  %v750_v10 = vld [vmem:[#allocation2 + $0x8] sm:$0xff]   ;;  %v751_v11 = vld [vmem:[#allocation2 + $0x80] sm:$0xff]   ;;  %s583_s28 = sshll.u32 %s189_s27, 3  ;;  %s1032_s7 = scalar_lea.hbm %s1076_s3, %s607_s29 }
  0x38   : > { %s584_s20 = sshll.u32 %s193_s19, 2  ;;  %656 = vmatprep.subr.bf16.mxu0 %v887_v0  ;;  %638 = vmatprep.subr.bf16.mxu1 %v887_v0  ;;  %v752_v12 = vld [vmem:[#allocation2 + $0x78] sm:$0xff]   ;;  %v753_v13 = vld [vmem:[#allocation2 + $0x70] sm:$0xff]   ;;  %v754_v14 = vld [vmem:[#allocation2 + $0x68] sm:$0xff]   ;;  %s191_s30 = scalar_lea.vmem [#allocation7], %s583_s28 }
  0x39   : > { %s195_s26 = scalar_lea.vmem %s1073_s0, %s584_s20  ;;  %v755_v15 = vld [vmem:[#allocation2 + $0x60] sm:$0xff]   ;;  %v756_v16 = vld [vmem:[#allocation2 + $0x58] sm:$0xff]   ;;  %v585_v17 = vld [vmem:[#allocation5] ss:$0 sm:$0xff]  ;;  %s494_s4 = sshll.u32 %s191_s30, 4  ;;  %s1034_s4 = int_to_ptr.vmem [resolvable:$true] %s494_s4 }
  0x3a   : > { %v197_v2 = vld [vmem:[%s195_s26] sm:$0xf]  ;;  %v757_v26 = vld [vmem:[#allocation2 + $0x50] sm:$0xff]   ;;  %v758_v27 = vld [vmem:[#allocation2 + $0x48] sm:$0xff]   ;;  %s481_s8 = scalar_lea.sflag [#allocation4], %s189_s27  ;;  %s811_s9 = scalar_lea.vmem %s1034_s4, 128 }
  0x3b   : > { %633 = vmatmul.mubr.msk.bf16.vlgmr.msra.gmra.mxu0 %vm211_vm1, %v197_v2  ;;  %639 = vmatpush3.bf16.msra.mxu1 %v744_v4  ;;  %v588_v28 = vld [vmem:[#allocation5 + $0x8] ss:$0 sm:$0xff]  ;;  %v597_v37 = vld [vmem:[#allocation5 + $0x10] ss:$0 sm:$0xff]  ;;  %p812_p10 = scmp.ne.s32.totalorder %s1034_s4, %s811_s9  ;;  %s889_s16 = smov [#allocation7]  }
  0x3c   : > { %672 = vmatprep.mubr.msk.bf16.mxu0 %vm888_vm0, %v887_v0  ;;  %640 = vmatprep.subr.bf16.mxu1 %v887_v0  ;;  %s815_s10 = sshll.u32 %s889_s16, 4  ;;  %s816_s10 = int_to_ptr.vmem [resolvable:$false] %s815_s10 }
  0x3d   : > { %657 = vmatpush3.bf16.msra.mxu0 %v751_v11  ;;  %p813_p12 = pnand %p812_p10, %p948_p5  ;;  %s817_s11 = scalar_lea.vmem %s816_s10, 256 }
  0x3e   : > { %658 = vmatprep.subr.bf16.mxu0 %v887_v0  ;;  %p818_p11 = scmp.lt.s32.totalorder %s1034_s4, %s816_s10  ;;  %p819_p0 = scmp.lt.s32.totalorder %s817_s11, %s811_s9 }
  0x3f   : > { %641 = vmatpush3.bf16.msra.mxu1 %v745_v5  ;;  %p814_p8 = pneg %p813_p12 }
  0x40   : > { %642 = vmatprep.subr.bf16.mxu1 %v887_v0  ;;  %p820_p1 = por %p819_p0, %p818_p11 }
  0x41   : > { %659 = vmatpush3.bf16.msra.mxu0 %v752_v12 }
  0x42   : > { %660 = vmatprep.subr.bf16.mxu0 %v887_v0  ;;  %p821_p3 = pnand %p820_p1, %p814_p8 }
  0x43   : > { %643 = vmatpush3.bf16.msra.mxu1 %v746_v6 }
  0x44   : > { %644 = vmatprep.subr.bf16.mxu1 %v887_v0 }
  0x45   : > { %661 = vmatpush3.bf16.msra.mxu0 %v753_v13 }
  0x46   : > { %662 = vmatprep.subr.bf16.mxu0 %v887_v0 }
  0x47   : > { %645 = vmatpush3.bf16.msra.mxu1 %v747_v7 }
  0x48   : > { %646 = vmatprep.subr.bf16.mxu1 %v887_v0 }
  0x49   : > { %663 = vmatpush3.bf16.msra.mxu0 %v754_v14 }
  0x4a   : > { %664 = vmatprep.subr.bf16.mxu0 %v887_v0 }
  0x4b   : > { %647 = vmatpush3.bf16.msra.mxu1 %v748_v8 }
  0x4c   : > { %648 = vmatprep.subr.bf16.mxu1 %v887_v0 }
  0x4d   : > { %665 = vmatpush3.bf16.msra.mxu0 %v755_v15 }
  0x4e   : > { %666 = vmatprep.subr.bf16.mxu0 %v887_v0 }
  0x4f   : > { %649 = vmatpush3.bf16.msra.mxu1 %v749_v9 }
  0x50   : > { %650 = vmatprep.subr.bf16.mxu1 %v887_v0 }
  0x51   : > { %667 = vmatpush3.bf16.msra.mxu0 %v756_v16 }
  0x52   : > { %668 = vmatprep.subr.bf16.mxu0 %v887_v0 }
  0x53   : > { %651 = vmatpush3.bf16.msra.mxu1 %v750_v10 }
  0x55   : > { %669 = vmatpush3.bf16.msra.mxu0 %v757_v26 }
  0x56   : > { %670 = vmatprep.subr.bf16.mxu0 %v887_v0 }
  0x59   : > { %671 = vmatpush3.bf16.msra.mxu0 %v758_v27 }
  0xfb   : > { %v249_v18 = vpop.f32.mrf.mxu0 }
  0xfc   : > { %v250_v19 = vadd.f32 %v585_v17, %v249_v18 }
  0xfd   : > { %v634_v20 = vpop.f32.mrf.mxu0 }
  0xfe   : > { %v255_v21 = vmul.f32 0.01, %v250_v19 }
  0xff   : > { %v252_v22 = vpop.f32.mrf.mxu0 }
 0x100   : > { %v256_v23 = vmax.f32 %v250_v19, %v255_v21 }
 0x101   : > { %v635_v24 = vpop.f32.mrf.mxu0 }
 0x102   : > { %v257_v25 = vpack.c.bf16 %v256_v23, %v256_v23 }
 0x104   : > { %653 = vmatmul.mubr.bf16.vlgmr.msra.gmra.mxu1 %v257_v25 }
 0x1c4   : > { %v361_v29 = vpop.f32.mrf.mxu1 }
 0x1c5   : > { %v362_v30 = vadd.f32 %v588_v28, %v361_v29 }
 0x1c6   : > { %v654_v31 = vpop.f32.mrf.mxu1 }
 0x1c7   : > { %v367_v32 = vmul.f32 0.01, %v362_v30 }
 0x1c8   : > { %v364_v33 = vpop.f32.mrf.mxu1 }
 0x1c9   : > { %v368_v34 = vmax.f32 %v362_v30, %v367_v32 }
 0x1ca   : > { %v655_v35 = vpop.f32.mrf.mxu1 }
 0x1cb   : > { %v369_v36 = vpack.c.bf16 %v368_v34, %v368_v34 }
 0x1cd   : > { %673 = vmatmul.mubr.bf16.vlgmr.msra.gmra.mxu0 %v369_v36 }
 0x28d   : > { %v473_v38 = vpop.f32.mrf.mxu0 }
 0x28e   : > { %v474_v39 = vadd.f32 %v597_v37, %v473_v38 }
 0x28f   : > { %v674_v40 = vpop.f32.mrf.mxu0 }
 0x290   : > { %479 = vst [vmem:[%s191_s30] sm:$0xff] %v474_v39 }
 0x291   : > { %v476_v41 = vpop.f32.mrf.mxu0 }
 0x292   : > { %824 = shalt.err (!%p821_p3)
}
 0x293   : > { %s825_s17 = scalar_lea.hbm %s1032_s7, 128  ;;  %s829_s24 = scalar_lea.hbm %s1076_s3, 384 }
 0x294   : > { %p826_p2 = scmp.ne.s32.totalorder %s1032_s7, %s825_s17  ;;  %p830_p6 = scmp.lt.s32.totalorder %s1032_s7, %s1076_s3 }
 0x295   : > { %p831_p9 = scmp.lt.s32.totalorder %s829_s24, %s825_s17 }
 0x296   : > { %p827_p4 = pnand %p826_p2, %p948_p5 }
 0x297   : > { %p832_p7 = por %p831_p9, %p830_p6 }
 0x298   : > { %p828_p13 = pneg %p827_p4 }
 0x29a   : > { %p833_p10 = pnand %p832_p7, %p828_p13 }
 0x29c   : > { %836 = shalt.err (!%p833_p10)
}
 0x29d   : > { %684 = dma.vmem_to_hbm [thread:$0]  (%p948_p5), %s1034_s4, 128, %s1032_s7, %s481_s8   ;;  %v675_v42 = vpop.f32.mrf.mxu0 }
 0x29e PF: > { %p701_p12 = scmp.ge.s32.totalorder %s879_s15, 2  ;;  %s506_s27 = sand.u32 1, %s867_s12  }
 0x29f   : > { %p1086_p8 = scmp.ne.s32.totalorder %s1079_s23, 0  ;;  %s507_s28 = scalar_lea.sflag [#allocation4], %s506_s27 }
 0x2a1   : > { %p694_p11 = pnand %p701_p12, %p1086_p8 }
 0x2a3   : > { %p695_p0 = pneg %p694_p11 }
 0x2a5   : > { %862 = dma.done.wait (%p695_p0), %s507_s28, 128  }
 0x2a6   : > { %864 = vsyncadd (%p695_p0), %s507_s28, 4294967168  ;;  %p15_p1 = scmp.ge.s32.totalorder %s935_s18, 5   ;;  %s1087_s12 = smov %s871_s13 }
 0x2a7   : > { %s1088_s13 = smov %s875_s14  ;;  %s1089_s14 = smov %s946_s21 }
 0x2a8   : > { %s1090_s15 = smov %s935_s18  ;;  %17 = sbr.rel (!%p15_p1) target bundleno = 5 (0x5), region = 76 }
 0x2ad   :  { %512 = vsyncpa [#allocation3], 1 }
 0x2ae   :  { %514 = vsyncpa [#allocation3 + $0x1], 1 }
 0x2af   :  { %515 = vsyncpa [#allocation6], 1 }
 0x2b0   :  { %516 = vsyncpa [#allocation4], 1 }
 0x2b1   :  { %518 = vsyncpa [#allocation4 + $0x1], 1 }

</bundles_post_ra>
